<compile_context>
chip_gen: v6e
topology: v6e:2x2x1
jax: 0.10.0
libtpu: 0.0.40
codegen_flags: <defaults>
</compile_context>

<pallas_src>
import math

import jax
import jax.numpy as jnp
import numpy as np
from jax.experimental import pallas as pl
from jax.experimental.pallas import tpu as pltpu

# ---- fixed priors from the PyTorch module -----------------------------------
SIGMA_PRIOR = 30.0        # sigma_prior      = zeros + 30
ALPHA_PRIOR = 0.05        # alpha_prior      = zeros + 0.05
BIAS_SIGMA_PRIOR = 1.0    # bias_sigma_prior = zeros + 1.0

LOG_SIGMA_PRIOR = math.log(SIGMA_PRIOR)
LOG_ALPHA_PRIOR = math.log(ALPHA_PRIOR)
LOG_1M_ALPHA_PRIOR = math.log(1.0 - ALPHA_PRIOR)
LOG_BIAS_SIGMA_PRIOR = math.log(BIAS_SIGMA_PRIOR)            # = 0.0
INV_2_SIGMA_PRIOR_SQ = 1.0 / (2.0 * SIGMA_PRIOR ** 2)
INV_2_BIAS_SIGMA_PRIOR_SQ = 1.0 / (2.0 * BIAS_SIGMA_PRIOR ** 2)

_LANE = 128
_ROW_GRANULE = 16   # bf16 sublane packing granularity (also valid for f32)
_NEG_BIG = -1e30    # "minus infinity" for padded class columns


def _round_up(a, b):
    return ((a + b - 1) // b) * b


# ---------------------------------------------------------------------------
# Forward kernel: one batch tile per grid step.  Weights arrive fully
# preprocessed (e_w.T, var_w.T, bias_mu with -1e30 padding, bias_sigma^2), so
# the body is just two small matmuls, the noise injection, and a log_softmax.
# ---------------------------------------------------------------------------
def _fwd_kernel(x_ref, ew_ref, vw_ref, bmu_ref, bsig2_ref, eps_ref, out_ref):
    x = x_ref[...]                               # [TN, D] f32
    e_w = ew_ref[...]                            # [D, O_pad] f32 (resident)
    var_w = vw_ref[...]                          # [D, O_pad] f32 (resident)
    bmu = bmu_ref[...]                           # [1, O_pad]; padded cols -1e30
    bsig2 = bsig2_ref[...]                       # [1, O_pad]; padded cols 0
    eps = eps_ref[...].astype(jnp.float32)       # [TN, O_pad] streamed as bf16

    # local reparameterization trick (K on the last dim of x -> plain matmul)
    e_b = jnp.dot(x, e_w, preferred_element_type=jnp.float32) + bmu
    var_b = jnp.dot(x * x, var_w, preferred_element_type=jnp.float32) + bsig2
    act = e_b + jnp.sqrt(var_b) * eps            # padded cols stay ~-1e30

    # log_softmax over the class axis; padded columns are already ~-1e30 via
    # the bias padding, so no extra mask ops are needed.
    m = jnp.max(act, axis=1, keepdims=True)
    shifted = act - m
    lse = jnp.log(jnp.sum(jnp.exp(shifted), axis=1, keepdims=True))
    out_ref[...] = shifted - lse


# ---------------------------------------------------------------------------
# KL term: parameters only -> plain jnp (fused by XLA), no kernel launch.
# Uses log(sigmoid(x)) = -softplus(-x), log(1-sigmoid(x)) = -softplus(x).
# ---------------------------------------------------------------------------
def _kl_divergence(params):
    f32 = jnp.float32
    wmu = params["weight_mu"].astype(f32)
    wrho = params["weight_rho"].astype(f32)
    lam = params["lambdal"].astype(f32)
    bmu = params["bias_mu"].astype(f32)
    brho = params["bias_rho"].astype(f32)

    log_alpha = -jax.nn.softplus(-lam)
    log_1m_alpha = -jax.nn.softplus(lam)
    alpha_q = jnp.exp(log_alpha)
    one_m_alpha = jnp.exp(log_1m_alpha)
    w_sigma = jax.nn.softplus(wrho)
    b_sigma = jax.nn.softplus(brho)

    kl_bias = jnp.sum(
        (LOG_BIAS_SIGMA_PRIOR - jnp.log(b_sigma)) - 0.5
        + (b_sigma * b_sigma + bmu * bmu) * INV_2_BIAS_SIGMA_PRIOR_SQ)

    kl_weight = jnp.sum(
        alpha_q * ((LOG_SIGMA_PRIOR - jnp.log(w_sigma)) - 0.5
                   + (log_alpha - LOG_ALPHA_PRIOR)
                   + (w_sigma * w_sigma + wmu * wmu) * INV_2_SIGMA_PRIOR_SQ)
        + one_m_alpha * (log_1m_alpha - LOG_1M_ALPHA_PRIOR))

    return kl_bias + kl_weight


# ---------------------------------------------------------------------------
# Wrapper
# ---------------------------------------------------------------------------
def bayesian_network_forward(x, params, eps, *, tile_n=1024,
                             return_padded=False):
    """Training / sample=True forward of BayesianNetwork.

    Returns (log_probs [N, O], kl scalar).  With return_padded=True the
    padded (n_pad, 128) log-prob buffer is returned instead (columns >= O hold
    ~-1e30 and rows >= N are padding) to avoid the extra HBM pass of the final
    slice when the consumer can deal with padding."""
    f32 = jnp.float32
    x = x.astype(f32)
    N, D = x.shape
    O = params["weight_mu"].shape[0]

    # class axis padded to a lane-dense width -> unmasked full-lane stores
    o_pad = _round_up(max(O, _LANE), _LANE)
    pad_o = o_pad - O

    # batch tiling: big tiles (streaming kernel), but at least 2 grid steps
    # when there are enough rows so the "parallel" axis feeds both v7x TCs.
    n_gr = _round_up(max(N, _ROW_GRANULE), _ROW_GRANULE)
    tile_n = max(_ROW_GRANULE, min(_round_up(tile_n, _ROW_GRANULE), n_gr))
    if n_gr >= 2 * _ROW_GRANULE and n_gr // tile_n < 2:
        tile_n = _round_up((n_gr + 1) // 2, _ROW_GRANULE)
    n_pad = _round_up(n_gr, tile_n)

    # --- hoisted weight-only math (runs once, fused by XLA) -----------------
    wmu = params["weight_mu"].astype(f32)                       # [O, D]
    alpha_q = jax.nn.sigmoid(params["lambdal"].astype(f32))
    w_sigma = jax.nn.softplus(params["weight_rho"].astype(f32))
    b_sigma = jax.nn.softplus(params["bias_rho"].astype(f32))
    bmu = params["bias_mu"].astype(f32)

    e_w = wmu * alpha_q
    var_w = alpha_q * (w_sigma * w_sigma + (1.0 - alpha_q) * wmu * wmu)

    # transposed to [D, o_pad] so the in-kernel matmuls are plain K-on-last-dim
    e_w_t = jnp.pad(e_w.T, ((0, 0), (0, pad_o)))                # [D, o_pad]
    var_w_t = jnp.pad(var_w.T, ((0, 0), (0, pad_o)))            # [D, o_pad]
    # padded bias_mu columns hold -1e30 -> the bias add masks padded logits
    bmu_p = jnp.pad(bmu.reshape(1, O), ((0, 0), (0, pad_o)),
                    constant_values=_NEG_BIG)
    bsig2_p = jnp.pad((b_sigma * b_sigma).reshape(1, O),
                      ((0, 0), (0, pad_o)))

    x_p = jnp.pad(x, ((0, n_pad - N), (0, 0)))
    # eps is the widest stream -> bf16 (upcast in-kernel); padded cols unused
    # because var_b there is exactly 0.
    eps_p = jnp.pad(eps.astype(jnp.bfloat16), ((0, n_pad - N), (0, pad_o)))

    # VMEM: at tile_n=1024, D=32, o_pad=128 the double-buffered x/eps/out
    # tiles are ~1.8 MiB plus tiny resident weights -> far below the scoped
    # default on all of v5e/v6e/v7x.  (For very large D, add a K grid axis.)
    grid = (n_pad // tile_n,)
    out_p = pl.pallas_call(
        _fwd_kernel,
        out_shape=jax.ShapeDtypeStruct((n_pad, o_pad), f32),
        grid=grid,
        in_specs=[
            pl.BlockSpec((tile_n, D), lambda i: (i, 0)),       # x
            pl.BlockSpec((D, o_pad), lambda i: (0, 0)),        # e_w.T (resident)
            pl.BlockSpec((D, o_pad), lambda i: (0, 0)),        # var_w.T (resident)
            pl.BlockSpec((1, o_pad), lambda i: (0, 0)),        # bias_mu (-1e30 pad)
            pl.BlockSpec((1, o_pad), lambda i: (0, 0)),        # bias_sigma^2
            pl.BlockSpec((tile_n, o_pad), lambda i: (i, 0)),   # eps (bf16)
        ],
        out_specs=pl.BlockSpec((tile_n, o_pad), lambda i: (i, 0)),
        compiler_params=pltpu.CompilerParams(
            dimension_semantics=("parallel",)),   # both TCs on v7x
    )(x_p, e_w_t, var_w_t, bmu_p, bsig2_p, eps_p)

    kl = _kl_divergence(params)

    if return_padded:
        return out_p, kl
    return out_p[:N, :O], kl


# ---------------------------------------------------------------------------
# Pure-JAX references (sanity checks, match the PyTorch formulas directly)
# ---------------------------------------------------------------------------
def _forward_reference(x, params, eps):
    alpha_q = jax.nn.sigmoid(params["lambdal"])
    w_sigma = jnp.log1p(jnp.exp(params["weight_rho"]))
    b_sigma = jnp.log1p(jnp.exp(params["bias_rho"]))
    e_w = params["weight_mu"] * alpha_q
    var_w = alpha_q * (w_sigma ** 2 + (1 - alpha_q) * params["weight_mu"] ** 2)
    e_b = x @ e_w.T + params["bias_mu"]
    var_b = (x ** 2) @ var_w.T + b_sigma ** 2
    act = e_b + jnp.sqrt(var_b) * eps
    return jax.nn.log_softmax(act, axis=1)


def _kl_reference(params):
    alpha_q = jax.nn.sigmoid(params["lambdal"])
    w_sigma = jnp.log1p(jnp.exp(params["weight_rho"]))
    b_sigma = jnp.log1p(jnp.exp(params["bias_rho"]))
    kl_bias = jnp.sum(jnp.log(BIAS_SIGMA_PRIOR / b_sigma) - 0.5
                      + (b_sigma ** 2 + params["bias_mu"] ** 2)
                      / (2 * BIAS_SIGMA_PRIOR ** 2))
    kl_weight = jnp.sum(
        alpha_q * (jnp.log(SIGMA_PRIOR / w_sigma) - 0.5
                   + jnp.log(alpha_q / ALPHA_PRIOR)
                   + (w_sigma ** 2 + params["weight_mu"] ** 2)
                   / (2 * SIGMA_PRIOR ** 2))
        + (1 - alpha_q) * jnp.log((1 - alpha_q) / (1 - ALPHA_PRIOR)))
    return kl_bias + kl_weight


if __name__ == "__main__":
    key = jax.random.PRNGKey(0)
    p = 33                      # reference script uses BayesianLinear(p - 1, 3)
    in_features = p - 1         # 32
    out_features = 3
    N = 8                       # batch

    keys = jax.random.split(key, 7)
    x = jax.random.normal(keys[0], (N, in_features), dtype=jnp.float32)

    # deterministic parameter init matching the PyTorch __init__ ranges
    params = {
        "weight_mu": jax.random.uniform(keys[1], (out_features, in_features),
                                        minval=-0.01, maxval=0.01),
        "weight_rho": jax.random.uniform(keys[2], (out_features, in_features),
                                         minval=-5.0, maxval=-4.0),
        "lambdal": jax.random.uniform(keys[3], (out_features, in_features),
                                      minval=0.0, maxval=1.0),
        "bias_mu": jax.random.uniform(keys[4], (out_features,),
                                      minval=-0.01, maxval=0.01),
        "bias_rho": jax.random.uniform(keys[5], (out_features,),
                                       minval=-5.0, maxval=-4.0),
    }
    # torch.randn(...) in the LRT path -> deterministic normal noise passed in
    eps = jax.random.normal(keys[6], (N, out_features), dtype=jnp.float32)

    out, kl = bayesian_network_forward(x, params, eps)
    jax.block_until_ready((out, kl))

    # The kernel consumes the injected noise as bf16 (halves its HBM stream).
    # Tight check against the reference evaluated with the same quantized
    # noise (isolates kernel math) ...
    eps_q = eps.astype(jnp.bfloat16).astype(jnp.float32)
    ref_q = _forward_reference(x, params, eps_q)
    np.testing.assert_allclose(np.asarray(out), np.asarray(ref_q),
                               atol=1e-4, rtol=1e-4)
    # ... plus a looser check against the unquantized-noise forward.
    ref = _forward_reference(x, params, eps)
    np.testing.assert_allclose(np.asarray(out), np.asarray(ref),
                               atol=5e-3, rtol=5e-3)

    kl_ref = _kl_reference(params)
    np.testing.assert_allclose(float(kl), float(kl_ref), atol=1e-2, rtol=1e-4)

    assert out.shape == (N, out_features)
    print("KERNEL_OK")
</pallas_src>

<mosaic_0001>
module attributes {stable_mosaic.version = 11 : i64} {
  func.func @_fwd_kernel(%arg0: i32, %arg1: memref<16x32xf32, #tpu.memory_space<vmem>>, %arg2: memref<32x128xf32, #tpu.memory_space<vmem>>, %arg3: memref<32x128xf32, #tpu.memory_space<vmem>>, %arg4: memref<1x128xf32, #tpu.memory_space<vmem>>, %arg5: memref<1x128xf32, #tpu.memory_space<vmem>>, %arg6: memref<16x128xbf16, #tpu.memory_space<vmem>>, %arg7: memref<16x128xf32, #tpu.memory_space<vmem>>) attributes {dimension_semantics = [#tpu.dimension_semantics<parallel>], iteration_bounds = array<i64: 1>, scalar_prefetch = 0 : i64, scratch_operands = 0 : i64, tpu.core_type = #tpu.core_type<tc>, window_params = [{transform_indices = @transform_0, window_bounds = array<i64: 16, 32>}, {pipeline_mode = #tpu.pipeline_mode<synchronous>, transform_indices = @transform_1, window_bounds = array<i64: 32, 128>}, {pipeline_mode = #tpu.pipeline_mode<synchronous>, transform_indices = @transform_2, window_bounds = array<i64: 32, 128>}, {pipeline_mode = #tpu.pipeline_mode<synchronous>, transform_indices = @transform_3, window_bounds = array<i64: 1, 128>}, {pipeline_mode = #tpu.pipeline_mode<synchronous>, transform_indices = @transform_4, window_bounds = array<i64: 1, 128>}, {transform_indices = @transform_5, window_bounds = array<i64: 16, 128>}, {transform_indices = @transform_6, window_bounds = array<i64: 16, 128>}]} {
    %c0 = arith.constant 0 : index
    %c0_0 = arith.constant 0 : index
    %0 = vector.load %arg1[%c0, %c0_0] : memref<16x32xf32, #tpu.memory_space<vmem>>, vector<16x32xf32>
    %c0_1 = arith.constant 0 : index
    %c0_2 = arith.constant 0 : index
    %1 = vector.load %arg2[%c0_1, %c0_2] : memref<32x128xf32, #tpu.memory_space<vmem>>, vector<32x128xf32>
    %c0_3 = arith.constant 0 : index
    %c0_4 = arith.constant 0 : index
    %2 = vector.load %arg3[%c0_3, %c0_4] : memref<32x128xf32, #tpu.memory_space<vmem>>, vector<32x128xf32>
    %c0_5 = arith.constant 0 : index
    %c0_6 = arith.constant 0 : index
    %3 = vector.load %arg4[%c0_5, %c0_6] : memref<1x128xf32, #tpu.memory_space<vmem>>, vector<1x128xf32>
    %c0_7 = arith.constant 0 : index
    %c0_8 = arith.constant 0 : index
    %4 = vector.load %arg5[%c0_7, %c0_8] : memref<1x128xf32, #tpu.memory_space<vmem>>, vector<1x128xf32>
    %c0_9 = arith.constant 0 : index
    %c0_10 = arith.constant 0 : index
    %5 = vector.load %arg6[%c0_9, %c0_10] : memref<16x128xbf16, #tpu.memory_space<vmem>>, vector<16x128xbf16>
    %6 = arith.extf %5 : vector<16x128xbf16> to vector<16x128xf32>
    %cst = arith.constant dense<0.000000e+00> : vector<16x128xf32>
    %7 = tpu.matmul %0, %1, %cst {dimension_numbers = #tpu.dot_dimension_numbers<[1], [0], [0], [1], [0, 0, 1, 1], [], []>} : vector<16x32xf32>, vector<32x128xf32>, vector<16x128xf32> -> vector<16x128xf32>
    %8 = vector.broadcast %3 : vector<1x128xf32> to vector<16x128xf32>
    %9 = arith.addf %7, %8 : vector<16x128xf32>
    %10 = arith.mulf %0, %0 : vector<16x32xf32>
    %cst_11 = arith.constant dense<0.000000e+00> : vector<16x128xf32>
    %11 = tpu.matmul %10, %2, %cst_11 {dimension_numbers = #tpu.dot_dimension_numbers<[1], [0], [0], [1], [0, 0, 1, 1], [], []>} : vector<16x32xf32>, vector<32x128xf32>, vector<16x128xf32> -> vector<16x128xf32>
    %12 = vector.broadcast %4 : vector<1x128xf32> to vector<16x128xf32>
    %13 = arith.addf %11, %12 : vector<16x128xf32>
    %14 = math.sqrt %13 : vector<16x128xf32>
    %15 = arith.mulf %14, %6 : vector<16x128xf32>
    %16 = arith.addf %9, %15 : vector<16x128xf32>
    %cst_12 = arith.constant dense<0xFF800000> : vector<16xf32>
    %17 = vector.multi_reduction <maximumf>, %16, %cst_12 [1] : vector<16x128xf32> to vector<16xf32>
    %18 = vector.shape_cast %17 : vector<16xf32> to vector<16x1xf32>
    %19 = vector.broadcast %18 : vector<16x1xf32> to vector<16x128xf32>
    %20 = arith.subf %16, %19 : vector<16x128xf32>
    %21 = math.exp %20 : vector<16x128xf32>
    %cst_13 = arith.constant dense<0.000000e+00> : vector<16xf32>
    %22 = vector.multi_reduction <add>, %21, %cst_13 [1] : vector<16x128xf32> to vector<16xf32>
    %23 = vector.shape_cast %22 : vector<16xf32> to vector<16x1xf32>
    %24 = math.log %23 : vector<16x1xf32>
    %25 = vector.broadcast %24 : vector<16x1xf32> to vector<16x128xf32>
    %26 = arith.subf %20, %25 : vector<16x128xf32>
    %c0_14 = arith.constant 0 : index
    %c0_15 = arith.constant 0 : index
    %27 = vector.load %arg7[%c0_14, %c0_15] : memref<16x128xf32, #tpu.memory_space<vmem>>, vector<16x128xf32>
    tpu.vector_store %arg7[%c0_14, %c0_15], %26 {strides = array<i32>} : memref<16x128xf32, #tpu.memory_space<vmem>>, vector<16x128xf32>,
    return
  }
  func.func @transform_0(%arg0: i32) -> (i32, i32) {
    %c0_i32 = arith.constant 0 : i32
    %c0_i32_0 = arith.constant 0 : i32
    return %arg0, %c0_i32 : i32, i32
  }
  func.func @transform_1(%arg0: i32) -> (i32, i32) {
    %c0_i32 = arith.constant 0 : i32
    %c0_i32_0 = arith.constant 0 : i32
    %c0_i32_1 = arith.constant 0 : i32
    return %c0_i32, %c0_i32_0 : i32, i32
  }
  func.func @transform_2(%arg0: i32) -> (i32, i32) {
    %c0_i32 = arith.constant 0 : i32
    %c0_i32_0 = arith.constant 0 : i32
    %c0_i32_1 = arith.constant 0 : i32
    return %c0_i32, %c0_i32_0 : i32, i32
  }
  func.func @transform_3(%arg0: i32) -> (i32, i32) {
    %c0_i32 = arith.constant 0 : i32
    %c0_i32_0 = arith.constant 0 : i32
    %c0_i32_1 = arith.constant 0 : i32
    return %c0_i32, %c0_i32_0 : i32, i32
  }
  func.func @transform_4(%arg0: i32) -> (i32, i32) {
    %c0_i32 = arith.constant 0 : i32
    %c0_i32_0 = arith.constant 0 : i32
    %c0_i32_1 = arith.constant 0 : i32
    return %c0_i32, %c0_i32_0 : i32, i32
  }
  func.func @transform_5(%arg0: i32) -> (i32, i32) {
    %c0_i32 = arith.constant 0 : i32
    %c0_i32_0 = arith.constant 0 : i32
    return %arg0, %c0_i32 : i32, i32
  }
  func.func @transform_6(%arg0: i32) -> (i32, i32) {
    %c0_i32 = arith.constant 0 : i32
    %c0_i32_0 = arith.constant 0 : i32
    return %arg0, %c0_i32 : i32, i32
  }
}

</mosaic_0001>

<bundles_post_ra>
// kernel: tpu_custom_call.1
= control target key start
LH: loop header
LB: loop body
LE: loop exit
PB: predicated region body
PF: predicated region fallthrough
CT: control target
= control target key end

     0   :  { %11 = vsyncpa [#allocation3], 0  ;;  %s579_s0 = inlined_call_operand.hbm [shape: f32[16,32], index: 0, kind: input, shape index: {}]   ;;  %s580_s1 = inlined_call_operand.hbm [shape: f32[32,128], index: 1, kind: input, shape index: {}]   ;;  %s581_s2 = inlined_call_operand.hbm [shape: f32[32,128], index: 2, kind: input, shape index: {}]   ;;  %s582_s3 = inlined_call_operand.vmem [shape: f32[1,128], index: 3, kind: input, shape index: {}]   ;;  %s583_s4 = inlined_call_operand.hbm [shape: f32[1,128], index: 4, kind: input, shape index: {}]   ;;  %s584_s5 = inlined_call_operand.vmem [shape: bf16[16,128], index: 5, kind: input, shape index: {}]   ;;  %s585_s6 = inlined_call_operand.hbm [shape: f32[16,128], index: 6, kind: output, shape index: {}]  }
   0x1   :  { %12 = vsyncpa [#allocation6], 0 }
   0x2   :  { %13 = vsyncpa [#allocation9], 0 }
   0x3   :  { %14 = vsyncpa [#allocation4], 0  ;;  %s500_s21 = smov [#allocation5]   ;;  %s501_s23 = smov [#allocation2]  }
   0x4   :  { %s32_s22 = sshll.u32 %s500_s21, 4  ;;  %s20_s24 = sshll.u32 %s501_s23, 4  ;;  %s33_s22 = int_to_ptr.vmem [resolvable:$true] %s32_s22  ;;  %s21_s24 = int_to_ptr.vmem [resolvable:$true] %s20_s24 }
   0x5   :  { %s400_s25 = scalar_lea.vmem %s33_s22, 512  ;;  %p405_p1 = scmp.lt.s32.totalorder %s33_s22, %s33_s22 }
   0x6   :  { %p401_p0 = scmp.ne.s32.totalorder %s33_s22, %s400_s25  ;;  %p406_p2 = scmp.lt.s32.totalorder %s400_s25, %s400_s25 }
   0x8   :  { %p407_p3 = por %p406_p2, %p405_p1 }
   0xa   :  { %p408_p4 = pnand %p407_p3, %p401_p0 }
   0xc   :  { %411 = shalt.err (!%p408_p4)
}
   0xd   :  { %s502_s26 = smov 128   ;;  %s503_s27 = smov 8  }
   0xe   :  { %38 = dma.hbm_to_vmem [thread:$0]  %s580_s1, 512, %s33_s22, [#allocation6], %s502_s26, %s502_s26, %s503_s27  }
   0xf   :  { %s420_s30 = scalar_lea.vmem %s21_s24, 256  ;;  %p425_p6 = scmp.lt.s32.totalorder %s21_s24, %s21_s24 }
  0x10   :  { %p421_p5 = scmp.ne.s32.totalorder %s21_s24, %s420_s30  ;;  %p426_p7 = scmp.lt.s32.totalorder %s420_s30, %s420_s30 }
  0x12   :  { %p427_p8 = por %p426_p7, %p425_p6 }
  0x14   :  { %p428_p9 = pnand %p427_p8, %p421_p5 }
  0x16   :  { %431 = shalt.err (!%p428_p9)
}
  0x17   :  { %26 = dma.hbm_to_vmem [thread:$0]  %s579_s0, 256, %s21_s24, [#allocation3], %s502_s26, %s502_s26, %s503_s27  }
  0x18   :  { %s504_s9 = smov [#allocation7]   ;;  %s505_s11 = smov [#allocation8]  }
  0x19   :  { %s44_s10 = sshll.u32 %s504_s9, 4  ;;  %s59_s12 = sshll.u32 %s505_s11, 4  ;;  %s45_s10 = int_to_ptr.vmem [resolvable:$true] %s44_s10  ;;  %s60_s12 = int_to_ptr.vmem [resolvable:$true] %s59_s12 }
  0x1a   :  { %s440_s1 = scalar_lea.vmem %s45_s10, 512  ;;  %p445_p11 = scmp.lt.s32.totalorder %s45_s10, %s45_s10 }
  0x1b   :  { %p441_p10 = scmp.ne.s32.totalorder %s45_s10, %s440_s1  ;;  %p446_p12 = scmp.lt.s32.totalorder %s440_s1, %s440_s1 }
  0x1d   :  { %p447_p13 = por %p446_p12, %p445_p11 }
  0x1f   :  { %p448_p0 = pnand %p447_p13, %p441_p10 }
  0x21   :  { %451 = shalt.err (!%p448_p0)
}
  0x22   :  { %50 = dma.hbm_to_vmem [thread:$0]  %s581_s2, 512, %s45_s10, [#allocation6], %s502_s26, %s502_s26, %s503_s27  }
  0x23   :  { %s460_s0 = scalar_lea.vmem %s60_s12, 16  ;;  %s464_s15 = scalar_lea.vmem %s60_s12, 32 }
  0x24   :  { %p461_p1 = scmp.ne.s32.totalorder %s60_s12, %s460_s0  ;;  %p465_p2 = scmp.lt.s32.totalorder %s60_s12, %s60_s12 }
  0x25   :  { %p466_p3 = scmp.lt.s32.totalorder %s464_s15, %s460_s0 }
  0x27   :  { %p467_p4 = por %p466_p3, %p465_p2 }
  0x29   :  { %p468_p5 = pnand %p467_p4, %p461_p1 }
  0x2b   :  { %471 = shalt.err (!%p468_p5)
}
  0x2c   :  { %62 = dma.hbm_to_vmem [thread:$0]  %s583_s4, 16, %s60_s12, [#allocation9]  }
  0x2d   :  { %492 = dma.done.wait [#allocation3], 256  }
  0x2e   :  { %493 = vsyncadd [#allocation3], 4294967040 }
  0x2f   :  { %494 = dma.done.wait [#allocation6], 1024  }
  0x30   :  { %495 = vsyncadd [#allocation6], 4294966272 }
  0x31   :  { %496 = dma.done.wait [#allocation9], 16  }
  0x32   :  { %497 = vsyncadd [#allocation9], 4294967280  ;;  %v86_v0 = vld [vmem:[#allocation7 + $0x18] sm:$0xff]  ;;  %v85_v1 = vld [vmem:[#allocation7 + $0x10] sm:$0xff]  ;;  %vm99_vm0 = vcmask 261120  }
  0x33   :  { %362 = vmatprep.subr.mxu1 %v86_v0  ;;  %v77_v2 = vld [vmem:[#allocation2] sm:$0xff]  ;;  %v84_v3 = vld [vmem:[#allocation7 + $0x8] sm:$0xff]  ;;  %v78_v5 = vld [vmem:[#allocation2 + $0x8] sm:$0xff] }
  0x34   :  { %363 = vmatpush3.msra.mxu1 %v86_v0  ;;  %v181_v4 = vmul.f32 %v77_v2, %v77_v2  ;;  %v82_v6 = vld [vmem:[#allocation5 + $0x18] sm:$0xff]  ;;  %359 = vmatprep.mubr.msk.f32.mxu0 %vm99_vm0, %v77_v2  ;;  %v81_v7 = vld [vmem:[#allocation5 + $0x10] sm:$0xff]  ;;  %v83_v8 = vld [vmem:[#allocation7] sm:$0xff]  ;;  %v182_v9 = vmul.f32 %v78_v5, %v78_v5 }
  0x35   :  { %364 = vmatprep.subr.mxu1 %v85_v1  ;;  %351 = vmatprep.subr.mxu0 %v82_v6  ;;  %v80_v10 = vld [vmem:[#allocation5 + $0x8] sm:$0xff]  ;;  %v79_v11 = vld [vmem:[#allocation5] sm:$0xff]  ;;  %v336_v21 = vld [vmem:[%s584_s5] sm:$0xff]  }
  0x36   :  { %365 = vmatpush3.msra.mxu1 %v85_v1  ;;  %370 = vmatprep.mubr.msk.f32.mxu1 %vm99_vm0, %v181_v4  ;;  %v332_v12 = vld [vmem:[#allocation8] ss:$0 sm:$0xff]  ;;  %v337_v22 = vunpack.c.l.bf16 %v336_v21  ;;  %v329_v25 = vld [vmem:[%s582_s3] ss:$0 sm:$0xff]  ;;  %v338_v30 = vunpack.c.h.bf16 %v336_v21  ;;  %s506_s3 = smov [#allocation10]  }
  0x37   :  { %366 = vmatprep.subr.mxu1 %v84_v3  ;;  %352 = vmatpush3.msra.mxu0 %v82_v6  ;;  %s315_s5 = sshll.u32 %s506_s3, 4  ;;  %s316_s5 = int_to_ptr.vmem [resolvable:$true] %s315_s5 }
  0x38   :  { %367 = vmatpush3.msra.mxu1 %v84_v3  ;;  %353 = vmatprep.subr.mxu0 %v81_v7  ;;  %s472_s20 = scalar_lea.vmem %s316_s5, 256  ;;  %p477_p7 = scmp.lt.s32.totalorder %s316_s5, %s316_s5 }
  0x39   :  { %368 = vmatprep.subr.mxu1 %v83_v8  ;;  %354 = vmatpush3.msra.mxu0 %v81_v7  ;;  %p473_p6 = scmp.ne.s32.totalorder %s316_s5, %s472_s20  ;;  %p478_p8 = scmp.lt.s32.totalorder %s472_s20, %s472_s20 }
  0x3a   :  { %369 = vmatpush3.msra.mxu1 %v83_v8  ;;  %355 = vmatprep.subr.mxu0 %v80_v10 }
  0x3b   :  { %371 = vmatmul.mubr.msk.f32.vlgmr.msra.gmra.mxu1 %vm99_vm0, %v182_v9  ;;  %356 = vmatpush3.msra.mxu0 %v80_v10  ;;  %p479_p9 = por %p478_p8, %p477_p7 }
  0x3c   :  { %357 = vmatprep.subr.mxu0 %v79_v11 }
  0x3d   :  { %358 = vmatpush3.msra.mxu0 %v79_v11  ;;  %p480_p10 = pnand %p479_p9, %p473_p6 }
  0x3e   :  { %360 = vmatmul.mubr.msk.f32.vlgmr.msra.gmra.mxu0 %vm99_vm0, %v78_v5 }
  0xfb   :  { %v372_v13 = vpop.f32.mrf.mxu1 }
  0xfc   :  { %v267_v14 = vadd.f32 %v372_v13, %v332_v12 }
  0xfd   :  { %v261_v15 = vpop.f32.mrf.mxu1 }
  0xfe   :  { %380 = vrsqrt.f32 %v267_v14  ;;  %v262_v16 = vadd.f32 %v332_v12, %v261_v15  ;;  %v361_v18 = vpop.f32.mrf.mxu0  ;;  %vm279_vm1 = vcmp.eq.f32.partialorder %v267_v14, inf  ;;  %v282_v28 = vand.u32 2147483648, %v267_v14 }
  0xff   :  { %vm281_vm4 = vcmp.eq.f32.partialorder %v267_v14, 0.0  ;;  %v178_v35 = vadd.f32 %v361_v18, %v329_v25 }
 0x100   :  { %382 = vrsqrt.f32 %v262_v16  ;;  %v172_v26 = vpop.f32.mrf.mxu0  ;;  %vm272_vm2 = vcmp.eq.f32.partialorder %v262_v16, inf  ;;  %v275_v27 = vand.u32 2147483648, %v262_v16  ;;  %vm274_vm3 = vcmp.eq.f32.partialorder %v262_v16, 0.0 }
 0x101   :  { %v173_v33 = vadd.f32 %v329_v25, %v172_v26 }
 0x10b   :  { %v381_v17 = vpop.eup %380 }
 0x10c   :  { %v278_v19 = vmul.f32 %v381_v17, %v267_v14 }
 0x10d   :  { %v383_v20 = vpop.eup %382 }
 0x10e   :  { %v271_v23 = vmul.f32 %v383_v20, %v262_v16  ;;  %v280_v24 = vsel %vm279_vm1, %v267_v14, %v278_v19 }
 0x10f   :  { %v283_v32 = vsel %vm281_vm4, %v282_v28, %v280_v24 }
 0x110   :  { %v273_v29 = vsel %vm272_vm2, %v262_v16, %v271_v23  ;;  %v285_v37 = vmul.f32 %v338_v30, %v283_v32 }
 0x111   :  { %v276_v31 = vsel %vm274_vm3, %v275_v27, %v273_v29 }
 0x112   :  { %v284_v34 = vmul.f32 %v337_v22, %v276_v31  ;;  %v287_v38 = vadd.f32 %v285_v37, %v178_v35 }
 0x114   :  { %v286_v36 = vadd.f32 %v284_v34, %v173_v33 }
 0x116   :  { %288 = vmax.xlane.f32.xlu0 %v286_v36 }
 0x11a   :  { %290 = vmax.xlane.f32.xlu0 %v287_v38 }
 0x19f   :  { %v289_v39 = vpop.xlane.xlu0 %288 }
 0x1a0   :  { %v292_v40 = vsub.f32 %v286_v36, %v289_v39 }
 0x1a2   :  { %v294_v41 = vmul.f32 1.442695, %v292_v40 }
 0x1a3   :  { %v291_v42 = vpop.xlane.xlu0 %290 }
 0x1a4   :  { %v293_v43 = vsub.f32 %v287_v38, %v291_v42  ;;  %384 = vpow2.f32 %v294_v41 }
 0x1a6   :  { %v296_v44 = vmul.f32 1.442695, %v293_v43 }
 0x1a8   :  { %386 = vpow2.f32 %v296_v44 }
 0x1b1   :  { %v385_v45 = vpop.eup %384 }
 0x1b2   :  { %298 = vadd.xlane.f32.xlu1 %v385_v45 }
 0x1b5   :  { %v387_v46 = vpop.eup %386 }
 0x1b6   :  { %300 = vadd.xlane.f32.xlu1 %v387_v46 }
 0x23b   :  { %v299_v47 = vpop.xlane.xlu1 %298 }
 0x23c   :  { %388 = vlog2.f32 %v299_v47 }
 0x23f   :  { %v301_v48 = vpop.xlane.xlu1 %300 }
 0x240   :  { %390 = vlog2.f32 %v301_v48 }
 0x249   :  { %v389_v49 = vpop.eup %388 }
 0x24a   :  { %v303_v50 = vmul.f32 0.6931472, %v389_v49 }
 0x24c   :  { %v306_v51 = vsub.f32 %v292_v40, %v303_v50 }
 0x24d   :  { %v391_v52 = vpop.eup %390 }
 0x24e   :  { %v305_v53 = vmul.f32 0.6931472, %v391_v52  ;;  %308 = vst [vmem:[#allocation10] sm:$0xff] %v306_v51 }
 0x250   :  { %v307_v54 = vsub.f32 %v293_v43, %v305_v53 }
 0x252   :  { %309 = vst [vmem:[#allocation10 + $0x8] sm:$0xff] %v307_v54 }
 0x253   :  { %483 = shalt.err (!%p480_p10)
}
 0x254   :  { %321 = dma.vmem_to_hbm [thread:$0]  %s316_s5, 256, %s585_s6, [#allocation4], %s502_s26, %s502_s26, %s503_s27  }
 0x255   :  { %498 = dma.done.wait [#allocation4], 256  }
 0x256   :  { %499 = vsyncadd [#allocation4], 4294967040 }
 0x257   :  { %325 = vsyncpa [#allocation3], 1 }
 0x258   :  { %326 = vsyncpa [#allocation6], 1 }
 0x259   :  { %327 = vsyncpa [#allocation9], 1 }
 0x25a   :  { %328 = vsyncpa [#allocation4], 1 }

</bundles_post_ra>
